<compile_context>
chip_gen: v7x
topology: tpu7x:2x2x1
jax: 0.10.0
libtpu: 0.0.40
codegen_flags: <defaults>
</compile_context>

<pallas_src>
import jax
import jax.numpy as jnp
from jax.experimental import pallas as pl
from jax.experimental.pallas import tpu as pltpu

BN_EPS = 1e-5
_LANE = 128
_TARGET_LANES = 128 * 1024  # ~per-grid-step lane target (multiple of 128)


def _round_up(x, m):
    return ((x + m - 1) // m) * m


def _vmem_budget_bytes():
    """Generation-aware VMEM budget (leave compiler headroom)."""
    try:
        cap = pltpu.get_tpu_info().vmem_capacity_bytes
    except Exception:
        cap = 64 * 1024 * 1024  # conservative (v7x-sized) fallback
    # v5e/v6e (128 MiB) -> 96 MiB; v7x (64 MiB) -> 48 MiB.
    return min(96 * 1024 * 1024, (3 * cap) // 4)


def _choose_spatial_tile(hw, t_target):
    """Split hw into n_t lane-dense tiles of width T (multiple of 128, <= t_target).

    Returns (T, n_t); the padded extent is T * n_t >= hw with < 128*n_t waste.
    """
    n_t = -(-hw // t_target)                       # ceil(hw / t_target)
    T = _round_up(-(-hw // n_t), _LANE)            # round_up(ceil(hw / n_t), 128)
    return T, n_t


def _stats_kernel(x_ref, wt_ref, sum_ref, sumsq_ref):
    # x_ref: (Nb, Cin, T)   wt_ref: (Cout, Cin)
    # sum_ref / sumsq_ref: (1, Cout, 1) per-batch-group resident accumulators.
    @pl.when(pl.program_id(1) == 0)
    def _():
        sum_ref[...] = jnp.zeros_like(sum_ref)
        sumsq_ref[...] = jnp.zeros_like(sumsq_ref)

    wt = wt_ref[...]
    cout = wt.shape[0]
    s = jnp.zeros((cout, 1), jnp.float32)
    sq = jnp.zeros((cout, 1), jnp.float32)
    for b in range(x_ref.shape[0]):                       # static, small unroll
        y = jnp.dot(wt, x_ref[b], preferred_element_type=jnp.float32)  # (Cout, T)
        s = s + jnp.sum(y, axis=1, keepdims=True)
        sq = sq + jnp.sum(y * y, axis=1, keepdims=True)
    sum_ref[0] += s
    sumsq_ref[0] += sq


def _norm_kernel(x_ref, wt_ref, scale_ref, shift_ref, o_ref):
    # out = (W @ x) * scale + shift   (BatchNorm folded into per-channel scale/shift)
    wt = wt_ref[...]
    scale = scale_ref[...]
    shift = shift_ref[...]
    for b in range(x_ref.shape[0]):                       # static, small unroll
        y = jnp.dot(wt, x_ref[b], preferred_element_type=jnp.float32)  # (Cout, T)
        o_ref[b] = (y * scale + shift).astype(o_ref.dtype)


def conv2dn_forward(x_nchw, weight, gamma, beta):
    """Conv2d(kernel=1, bias=False) + BatchNorm2d (training-mode batch stats).

    x_nchw: (N, Cin, H, W)
    weight: (Cout, Cin)   -- PyTorch conv weight with the 1x1 spatial dims squeezed
    gamma, beta: (Cout,)  -- BatchNorm affine parameters
    """
    N, Cin, H, W = x_nchw.shape
    Cout = weight.shape[0]
    HW = H * W
    R = N * HW  # true element count for BN statistics (padding excluded)
    itemsize = jnp.dtype(x_nchw.dtype).itemsize

    vmem_budget = _vmem_budget_bytes()
    cin_p = _round_up(Cin, 8)
    cout_p = _round_up(Cout, 8)

    # Bytes per (batch-row, lane): double-buffered in + out blocks + f32 y temp.
    per_lane_bytes = 2 * (cin_p + cout_p) * itemsize + 4 * cout_p
    ws_cap = max(1, vmem_budget // 3)                       # working-set cap
    lane_cap = max(_LANE, ws_cap // per_lane_bytes)
    t_target = min(_TARGET_LANES, (lane_cap // _LANE) * _LANE)

    T, n_t = _choose_spatial_tile(HW, t_target)
    HW_pad = T * n_t

    # Fold batch into the block when the spatial tile alone is small.
    Nb = 1
    for d in range(1, N + 1):
        if N % d == 0 and d * T <= t_target and d * T * per_lane_bytes <= ws_cap:
            Nb = d
    Ng = N // Nb
    grid = (Ng, n_t)

    # Channels-first view: pure reshape, no transpose, no extra HBM traffic.
    x3d = x_nchw.reshape(N, Cin, HW)
    if HW_pad != HW:
        x3d = jnp.pad(x3d, ((0, 0), (0, 0), (0, HW_pad - HW)))
    wt = weight.astype(x_nchw.dtype)

    x_spec = pl.BlockSpec((Nb, Cin, T), lambda n, t: (n, 0, t))
    wt_spec = pl.BlockSpec((Cout, Cin), lambda n, t: (0, 0))
    vec_spec = pl.BlockSpec((Cout, 1), lambda n, t: (0, 0))
    part_spec = pl.BlockSpec((1, Cout, 1), lambda n, t: (n, 0, 0))

    # ---- Pass 1: per-channel sum / sum-of-squares of y = W @ x (per-n partials) ----
    psum, psumsq = pl.pallas_call(
        _stats_kernel,
        out_shape=(
            jax.ShapeDtypeStruct((Ng, Cout, 1), jnp.float32),
            jax.ShapeDtypeStruct((Ng, Cout, 1), jnp.float32),
        ),
        grid=grid,
        in_specs=[x_spec, wt_spec],
        out_specs=(part_spec, part_spec),
        compiler_params=pltpu.CompilerParams(
            dimension_semantics=("parallel", "arbitrary"),
            vmem_limit_bytes=vmem_budget,
        ),
        cost_estimate=pl.CostEstimate(
            flops=2 * R * Cin * Cout + 3 * R * Cout,
            transcendentals=0,
            bytes_accessed=N * Cin * HW_pad * itemsize,
        ),
    )(x3d, wt)

    # Fold BN into per-channel scale/shift (tiny (Cout,)-sized glue, f32).
    # TODO(synk): single-pass E[y^2]-E[y]^2 can lose precision for very large
    # |mean|/std ratios; per-n partials mitigate serial accumulation error.
    sums = jnp.sum(psum, axis=0)[:, 0]        # (Cout,)
    sumsqs = jnp.sum(psumsq, axis=0)[:, 0]    # (Cout,)
    g32 = gamma.astype(jnp.float32)
    b32 = beta.astype(jnp.float32)
    mean = sums / R
    var = jnp.maximum(sumsqs / R - mean * mean, 0.0)  # biased variance (train mode)
    inv_std = jax.lax.rsqrt(var + BN_EPS)
    scale = (g32 * inv_std).reshape(Cout, 1)
    shift = (b32 - mean * g32 * inv_std).reshape(Cout, 1)

    # ---- Pass 2: recompute y per tile and apply fused scale/shift ----
    out3d = pl.pallas_call(
        _norm_kernel,
        out_shape=jax.ShapeDtypeStruct((N, Cout, HW_pad), x_nchw.dtype),
        grid=grid,
        in_specs=[x_spec, wt_spec, vec_spec, vec_spec],
        out_specs=pl.BlockSpec((Nb, Cout, T), lambda n, t: (n, 0, t)),
        compiler_params=pltpu.CompilerParams(
            dimension_semantics=("parallel", "parallel"),
            vmem_limit_bytes=vmem_budget,
        ),
        cost_estimate=pl.CostEstimate(
            flops=2 * R * Cin * Cout + 2 * R * Cout,
            transcendentals=0,
            bytes_accessed=N * (Cin + Cout) * HW_pad * itemsize,
        ),
    )(x3d, wt, scale, shift)

    if HW_pad != HW:
        out3d = out3d[:, :, :HW]
    return out3d.reshape(N, Cout, H, W)


def conv2dn_reference(x_nchw, weight, gamma, beta):
    """Pure-JAX reference (two-pass BN) for a sanity check."""
    N, Cin, H, W = x_nchw.shape
    Cout = weight.shape[0]
    x3d = x_nchw.reshape(N, Cin, H * W).astype(jnp.float32)
    y = jnp.einsum("oc,ncr->nor", weight.astype(jnp.float32), x3d)  # (N, Cout, HW)
    mean = y.mean(axis=(0, 2), keepdims=True)
    var = ((y - mean) ** 2).mean(axis=(0, 2), keepdims=True)
    out = gamma.reshape(1, Cout, 1) * (y - mean) * jax.lax.rsqrt(var + BN_EPS) \
        + beta.reshape(1, Cout, 1)
    return out.reshape(N, Cout, H, W).astype(x_nchw.dtype)


if __name__ == "__main__":
    key = jax.random.PRNGKey(0)
    k_x, k_w = jax.random.split(key, 2)

    # Small shapes consistent with the module: in_channel=4, out_channel=8
    N, Cin, H, W = 2, 4, 16, 16
    Cout = 8

    x = jax.random.normal(k_x, (N, Cin, H, W), dtype=jnp.float32)

    # nn.Conv2d(Cin, Cout, 1, bias=False) weight (Cout, Cin, 1, 1) -> (Cout, Cin);
    # BatchNorm2d default affine init (gamma=1, beta=0).
    w_conv = jax.random.normal(k_w, (Cout, Cin, 1, 1), dtype=jnp.float32) * 0.1
    weight = w_conv[:, :, 0, 0]                       # (Cout, Cin)
    gamma = jnp.ones((Cout,), dtype=jnp.float32)
    beta = jnp.zeros((Cout,), dtype=jnp.float32)

    # TODO(synk): BatchNorm2d's training-time running_mean/running_var buffer
    # updates are a module side effect and are not emitted; the forward output
    # (which uses batch statistics) matches.

    out = conv2dn_forward(x, weight, gamma, beta)
    jax.block_until_ready(out)

    ref = conv2dn_reference(x, weight, gamma, beta)
    assert out.shape == (N, Cout, H, W)
    assert jnp.allclose(out, ref, atol=1e-4, rtol=1e-4)

    print("KERNEL_OK")
</pallas_src>

<mosaic_0001>
module attributes {stable_mosaic.version = 11 : i64} {
  func.func @_stats_kernel(%arg0: i32, %arg1: i32, %arg2: memref<2x4x256xf32, #tpu.memory_space<vmem>>, %arg3: memref<8x4xf32, #tpu.memory_space<vmem>>, %arg4: memref<1x8x1xf32, #tpu.memory_space<vmem>>, %arg5: memref<1x8x1xf32, #tpu.memory_space<vmem>>) attributes {dimension_semantics = [#tpu.dimension_semantics<parallel>, #tpu.dimension_semantics<arbitrary>], iteration_bounds = array<i64: 1, 1>, scalar_prefetch = 0 : i64, scratch_operands = 0 : i64, tpu.core_type = #tpu.core_type<tc>, window_params = [{transform_indices = @transform_0, window_bounds = array<i64: 2, 4, 256>}, {pipeline_mode = #tpu.pipeline_mode<synchronous>, transform_indices = @transform_1, window_bounds = array<i64: 8, 4>}, {transform_indices = @transform_2, window_bounds = array<i64: 1, 8, 1>}, {transform_indices = @transform_3, window_bounds = array<i64: 1, 8, 1>}]} {
    %c0_i32 = arith.constant 0 : i32
    %0 = arith.cmpi eq, %arg1, %c0_i32 : i32
    %1 = arith.extui %0 : i1 to i32
    %c0_i32_0 = arith.constant 0 : i32
    %2 = arith.cmpi ne, %1, %c0_i32_0 : i32
    scf.if %2 {
      %cst_26 = arith.constant 0.000000e+00 : f32
      %38 = vector.broadcast %cst_26 : f32 to vector<1x8x1xf32>
      %c0_27 = arith.constant 0 : index
      %c0_28 = arith.constant 0 : index
      %c0_29 = arith.constant 0 : index
      %39 = vector.load %arg4[%c0_27, %c0_28, %c0_29] : memref<1x8x1xf32, #tpu.memory_space<vmem>>, vector<1x8x1xf32>
      tpu.vector_store %arg4[%c0_27, %c0_28, %c0_29], %38 {strides = array<i32>} : memref<1x8x1xf32, #tpu.memory_space<vmem>>, vector<1x8x1xf32>,
      %cst_30 = arith.constant 0.000000e+00 : f32
      %40 = vector.broadcast %cst_30 : f32 to vector<1x8x1xf32>
      %c0_31 = arith.constant 0 : index
      %c0_32 = arith.constant 0 : index
      %c0_33 = arith.constant 0 : index
      %41 = vector.load %arg5[%c0_31, %c0_32, %c0_33] : memref<1x8x1xf32, #tpu.memory_space<vmem>>, vector<1x8x1xf32>
      tpu.vector_store %arg5[%c0_31, %c0_32, %c0_33], %40 {strides = array<i32>} : memref<1x8x1xf32, #tpu.memory_space<vmem>>, vector<1x8x1xf32>,
    } else {
    }
    %c0 = arith.constant 0 : index
    %c0_1 = arith.constant 0 : index
    %3 = vector.load %arg3[%c0, %c0_1] : memref<8x4xf32, #tpu.memory_space<vmem>>, vector<8x4xf32>
    %cst = arith.constant 0.000000e+00 : f32
    %4 = vector.broadcast %cst : f32 to vector<8x1xf32>
    %cst_2 = arith.constant 0.000000e+00 : f32
    %5 = vector.broadcast %cst_2 : f32 to vector<8x1xf32>
    %c0_3 = arith.constant 0 : index
    %c0_4 = arith.constant 0 : index
    %c0_5 = arith.constant 0 : index
    %6 = vector.load %arg2[%c0_3, %c0_4, %c0_5] : memref<2x4x256xf32, #tpu.memory_space<vmem>>, vector<1x4x256xf32>
    %7 = vector.shape_cast %6 : vector<1x4x256xf32> to vector<4x256xf32>
    %cst_6 = arith.constant dense<0.000000e+00> : vector<8x256xf32>
    %8 = tpu.matmul %3, %7, %cst_6 {dimension_numbers = #tpu.dot_dimension_numbers<[1], [0], [0], [1], [0, 0, 1, 1], [], []>} : vector<8x4xf32>, vector<4x256xf32>, vector<8x256xf32> -> vector<8x256xf32>
    %cst_7 = arith.constant dense<0.000000e+00> : vector<8xf32>
    %9 = vector.multi_reduction <add>, %8, %cst_7 [1] : vector<8x256xf32> to vector<8xf32>
    %10 = vector.shape_cast %9 : vector<8xf32> to vector<8x1xf32>
    %11 = arith.addf %4, %10 : vector<8x1xf32>
    %12 = arith.mulf %8, %8 : vector<8x256xf32>
    %cst_8 = arith.constant dense<0.000000e+00> : vector<8xf32>
    %13 = vector.multi_reduction <add>, %12, %cst_8 [1] : vector<8x256xf32> to vector<8xf32>
    %14 = vector.shape_cast %13 : vector<8xf32> to vector<8x1xf32>
    %15 = arith.addf %5, %14 : vector<8x1xf32>
    %c1 = arith.constant 1 : index
    %c0_9 = arith.constant 0 : index
    %c0_10 = arith.constant 0 : index
    %16 = vector.load %arg2[%c1, %c0_9, %c0_10] : memref<2x4x256xf32, #tpu.memory_space<vmem>>, vector<1x4x256xf32>
    %17 = vector.shape_cast %16 : vector<1x4x256xf32> to vector<4x256xf32>
    %cst_11 = arith.constant dense<0.000000e+00> : vector<8x256xf32>
    %18 = tpu.matmul %3, %17, %cst_11 {dimension_numbers = #tpu.dot_dimension_numbers<[1], [0], [0], [1], [0, 0, 1, 1], [], []>} : vector<8x4xf32>, vector<4x256xf32>, vector<8x256xf32> -> vector<8x256xf32>
    %cst_12 = arith.constant dense<0.000000e+00> : vector<8xf32>
    %19 = vector.multi_reduction <add>, %18, %cst_12 [1] : vector<8x256xf32> to vector<8xf32>
    %20 = vector.shape_cast %19 : vector<8xf32> to vector<8x1xf32>
    %21 = arith.addf %11, %20 : vector<8x1xf32>
    %22 = arith.mulf %18, %18 : vector<8x256xf32>
    %cst_13 = arith.constant dense<0.000000e+00> : vector<8xf32>
    %23 = vector.multi_reduction <add>, %22, %cst_13 [1] : vector<8x256xf32> to vector<8xf32>
    %24 = vector.shape_cast %23 : vector<8xf32> to vector<8x1xf32>
    %25 = arith.addf %15, %24 : vector<8x1xf32>
    %c0_14 = arith.constant 0 : index
    %c0_15 = arith.constant 0 : index
    %c0_16 = arith.constant 0 : index
    %26 = vector.load %arg4[%c0_14, %c0_15, %c0_16] : memref<1x8x1xf32, #tpu.memory_space<vmem>>, vector<1x8x1xf32>
    %27 = vector.shape_cast %26 : vector<1x8x1xf32> to vector<8x1xf32>
    %28 = arith.addf %27, %21 : vector<8x1xf32>
    %c0_17 = arith.constant 0 : index
    %c0_18 = arith.constant 0 : index
    %c0_19 = arith.constant 0 : index
    %29 = vector.load %arg4[%c0_17, %c0_18, %c0_19] : memref<1x8x1xf32, #tpu.memory_space<vmem>>, vector<1x8x1xf32>
    %30 = vector.shape_cast %29 : vector<1x8x1xf32> to vector<8x1xf32>
    %31 = vector.shape_cast %28 : vector<8x1xf32> to vector<1x8x1xf32>
    tpu.vector_store %arg4[%c0_17, %c0_18, %c0_19], %31 {strides = array<i32>} : memref<1x8x1xf32, #tpu.memory_space<vmem>>, vector<1x8x1xf32>,
    %c0_20 = arith.constant 0 : index
    %c0_21 = arith.constant 0 : index
    %c0_22 = arith.constant 0 : index
    %32 = vector.load %arg5[%c0_20, %c0_21, %c0_22] : memref<1x8x1xf32, #tpu.memory_space<vmem>>, vector<1x8x1xf32>
    %33 = vector.shape_cast %32 : vector<1x8x1xf32> to vector<8x1xf32>
    %34 = arith.addf %33, %25 : vector<8x1xf32>
    %c0_23 = arith.constant 0 : index
    %c0_24 = arith.constant 0 : index
    %c0_25 = arith.constant 0 : index
    %35 = vector.load %arg5[%c0_23, %c0_24, %c0_25] : memref<1x8x1xf32, #tpu.memory_space<vmem>>, vector<1x8x1xf32>
    %36 = vector.shape_cast %35 : vector<1x8x1xf32> to vector<8x1xf32>
    %37 = vector.shape_cast %34 : vector<8x1xf32> to vector<1x8x1xf32>
    tpu.vector_store %arg5[%c0_23, %c0_24, %c0_25], %37 {strides = array<i32>} : memref<1x8x1xf32, #tpu.memory_space<vmem>>, vector<1x8x1xf32>,
    return
  }
  func.func @transform_0(%arg0: i32, %arg1: i32) -> (i32, i32, i32) {
    %c0_i32 = arith.constant 0 : i32
    %c0_i32_0 = arith.constant 0 : i32
    return %arg0, %c0_i32, %arg1 : i32, i32, i32
  }
  func.func @transform_1(%arg0: i32, %arg1: i32) -> (i32, i32) {
    %c0_i32 = arith.constant 0 : i32
    %c0_i32_0 = arith.constant 0 : i32
    %c0_i32_1 = arith.constant 0 : i32
    return %c0_i32, %c0_i32_0 : i32, i32
  }
  func.func @transform_2(%arg0: i32, %arg1: i32) -> (i32, i32, i32) {
    %c0_i32 = arith.constant 0 : i32
    %c0_i32_0 = arith.constant 0 : i32
    %c0_i32_1 = arith.constant 0 : i32
    return %arg0, %c0_i32, %c0_i32_0 : i32, i32, i32
  }
  func.func @transform_3(%arg0: i32, %arg1: i32) -> (i32, i32, i32) {
    %c0_i32 = arith.constant 0 : i32
    %c0_i32_0 = arith.constant 0 : i32
    %c0_i32_1 = arith.constant 0 : i32
    return %arg0, %c0_i32, %c0_i32_0 : i32, i32, i32
  }
}

</mosaic_0001>

<bundles_post_ra>
// kernel: tpu_custom_call.1
= control target key start
LH: loop header
LB: loop body
LE: loop exit
PB: predicated region body
PF: predicated region fallthrough
CT: control target
= control target key end

     0   :  { %9 = vsyncpa [#allocation3], 0  ;;  %s269_s12 = smov [#allocation2]   ;;  %s330_s0 = inlined_call_operand.hbm [shape: f32[2,4,256], index: 0, kind: input, shape index: {}]   ;;  %s331_s1 = inlined_call_operand.vmem [shape: f32[8,4], index: 1, kind: input, shape index: {}]   ;;  %s332_s2 = inlined_call_operand.vmem [shape: f32[1,8,1], index: 2, kind: output, shape index: {0}]   ;;  %s333_s3 = inlined_call_operand.vmem [shape: f32[1,8,1], index: 3, kind: output, shape index: {1}]  }
   0x1   :  { %s15_s13 = sshll.u32 %s269_s12, 4  ;;  %s245_s16 = scalar_lea.hbm %s330_s0, 256  ;;  %s16_s13 = int_to_ptr.vmem [resolvable:$true] %s15_s13 }
   0x2   :  { %p246_p0 = scmp.ne.s32.totalorder %s330_s0, %s245_s16  ;;  %p249_p1 = scmp.lt.u32.totalorder %s245_s16, %s330_s0 }
   0x4   :  { %p251_p2 = pnand %p249_p1, %p246_p0 }
   0x6   :  { %254 = shalt.err (!%p251_p2)
}
   0x7   :  { %s255_s21 = scalar_lea.vmem %s16_s13, 256  ;;  %p260_p4 = scmp.lt.s32.totalorder %s16_s13, %s16_s13 }
   0x8   :  { %p256_p3 = scmp.ne.s32.totalorder %s16_s13, %s255_s21  ;;  %p261_p5 = scmp.lt.s32.totalorder %s255_s21, %s255_s21 }
   0xa   :  { %p262_p6 = por %p261_p5, %p260_p4 }
   0xc   :  { %p263_p7 = pnand %p262_p6, %p256_p3 }
   0xe   :  { %266 = shalt.err (!%p263_p7)
}
   0xf   :  { %s270_s22 = smov 128   ;;  %s271_s23 = smov 8  }
  0x10   :  { %21 = dma.hbm_to_vmem [thread:$0]  %s330_s0, 256, %s16_s13, [#allocation3], %s270_s22, %s270_s22, %s271_s23  }
  0x11   :  { %267 = dma.done.wait [#allocation3], 256  }
  0x12   :  { %268 = vsyncadd [#allocation3], 4294967040  ;;  %vm31_vm0 = vcmask 7168   ;;  %v272_v0 = vmov 0.0   ;;  %v35_v1 = vld [vmem:[#allocation2] sm:$0xff]  ;;  %vm42_vm1 = vcmask 1043456  }
  0x13   :  { %32 = vst.msk [vmem:[%s332_s2] sm:$0xff] %vm31_vm0, %v272_v0  ;;  %33 = vst.msk [vmem:[%s333_s3] sm:$0xff] %vm31_vm0, %v272_v0  ;;  %111 = vmatprep.mubr.f32.mxu0 %v272_v0  ;;  %200 = vmatprep.mubr.f32.mxu1 %v272_v0  ;;  %v129_v2 = vld [vmem:[#allocation2 + $0x8] sm:$0xff]  ;;  %v37_v3 = vcombine.high %v35_v1, %v35_v1  ;;  %v34_v5 = vld [vmem:[%s331_s1] sm:$0xff]  ;;  %vm38_vm2 = vcmask 31744  }
  0x14   :  { %v131_v4 = vcombine.high %v129_v2, %v129_v2 }
  0x15   :  { %233 = vmatprep.subr.msk.mxu0 %vm42_vm1, %v37_v3 }
  0x16   :  { %236 = vmatprep.subr.msk.mxu1 %vm42_vm1, %v131_v4  ;;  %234 = vmatpush1.msk.msra.mxu0 %vm42_vm1, %v35_v1 }
  0x17   :  { %237 = vmatpush1.msk.msra.mxu1 %vm42_vm1, %v129_v2  ;;  %235 = vmatmul.mubr.msk.f32.vlgmr.msra.gmra.mrb[0].mxu0 %vm38_vm2, %v34_v5 }
  0x18   :  { %238 = vmatmul.mubr.msk.f32.vlgmr.msra.gmra.mrb[0].mxu1 %vm38_vm2, %v34_v5 }
  0x1a   :  { %v217_v20 = vld [vmem:[%s332_s2] sm:$0xff] }
  0x1b   :  { %v221_v25 = vld [vmem:[%s333_s3] sm:$0xff] }
  0xea   :  { %v113_v6 = vpop.f32.mrb[0].mxu0 }
  0xeb   :  { %v202_v7 = vpop.f32.mrb[0].mxu1  ;;  %v122_v8 = vmul.f32 %v113_v6, %v113_v6  ;;  %v115_v10 = vpop.f32.mrb[1].mxu0 }
  0xec   :  { %v211_v9 = vmul.f32 %v202_v7, %v202_v7  ;;  %v204_v11 = vpop.f32.mrb[1].mxu1  ;;  %v123_v12 = vmul.f32 %v115_v10, %v115_v10  ;;  %v118_v15 = vadd.f32 %v115_v10, %v113_v6 }
  0xed   :  { %v212_v13 = vmul.f32 %v204_v11, %v204_v11  ;;  %v207_v14 = vadd.f32 %v204_v11, %v202_v7 }
  0xee   :  { %119 = vadd.xlane.f32.xlu0 %v118_v15  ;;  %v124_v17 = vadd.f32 %v123_v12, %v122_v8 }
  0xef   :  { %208 = vadd.xlane.f32.xlu1 %v207_v14  ;;  %v213_v16 = vadd.f32 %v212_v13, %v211_v9 }
  0xf2   :  { %125 = vadd.xlane.f32.xlu0 %v124_v17 }
  0xf3   :  { %214 = vadd.xlane.f32.xlu1 %v213_v16 }
 0x17b   :  { %v120_v19 = vpop.xlane.xlu0 %119 }
 0x17c   :  { %v209_v18 = vpop.xlane.xlu1 %208 }
 0x17d   :  { %v210_v21 = vadd.f32 %v209_v18, %v120_v19 }
 0x17f   :  { %v218_v22 = vadd.f32 %v217_v20, %v210_v21  ;;  %v126_v24 = vpop.xlane.xlu0 %125 }
 0x180   :  { %v215_v23 = vpop.xlane.xlu1 %214 }
 0x181   :  { %220 = vst.msk [vmem:[%s332_s2] sm:$0xff] %vm31_vm0, %v218_v22  ;;  %v216_v26 = vadd.f32 %v215_v23, %v126_v24 }
 0x183   :  { %v222_v27 = vadd.f32 %v221_v25, %v216_v26 }
 0x185   :  { %223 = vst.msk [vmem:[%s333_s3] sm:$0xff] %vm31_vm0, %v222_v27 }
 0x186   :  { %232 = vsyncpa [#allocation3], 1 }

</bundles_post_ra>
